<compile_context>
chip_gen: v7x
topology: tpu7x:2x2x1
jax: 0.10.0
libtpu: 0.0.40
codegen_flags: <defaults>
</compile_context>

<pallas_src>
import functools

import jax
import jax.numpy as jnp
from jax.experimental import pallas as pl
from jax.experimental.pallas import tpu as pltpu

LANE = 128        # lane width: every feature axis is padded to a multiple of this
SUBLANE = 8       # batch tile must be a multiple of 8 sublanes
NEG_SLOPE = 0.01  # PyTorch nn.LeakyReLU default negative_slope
NEG_BIG = -1e30   # "minus infinity" for padded output lanes (avoids inf-inf/NaN)


def _round_up(x, m):
    return (x + m - 1) // m * m


def _physical_vmem_bytes():
    """Per-TensorCore VMEM capacity; conservative 64 MiB (v7x) if query fails."""
    try:
        info = pltpu.get_tpu_info()
        for attr in ("vmem_capacity_bytes", "vmem_bytes", "vmem_size_bytes"):
            v = getattr(info, attr, None)
            if v:
                return int(v)
    except Exception:
        pass
    return 64 * 2**20


def mlp_kernel(x_ref, w1_ref, b1_ref, w2_ref, b2_ref, w3_ref, b3_ref, o_ref):
    # bf16 inputs to the MXU, f32 accumulation; elementwise tail stays f32.
    x = x_ref[...].astype(jnp.bfloat16)

    # fc1 + LeakyReLU
    h = jnp.dot(x, w1_ref[...], preferred_element_type=jnp.float32) + b1_ref[...]
    h = jnp.maximum(h, NEG_SLOPE * h)

    # fc2
    h = jnp.dot(h.astype(jnp.bfloat16), w2_ref[...],
                preferred_element_type=jnp.float32) + b2_ref[...]

    # fc3 (padded output lanes carry a -1e30 bias so they vanish in logsumexp)
    h = jnp.dot(h.astype(jnp.bfloat16), w3_ref[...],
                preferred_element_type=jnp.float32) + b3_ref[...]

    # LogSoftmax over the feature (lane) axis, numerically stable, all f32.
    m = jnp.max(h, axis=-1, keepdims=True)
    s = h - m
    lse = jnp.log(jnp.sum(jnp.exp(s), axis=-1, keepdims=True))
    o_ref[...] = (s - lse).astype(o_ref.dtype)


def prepare_params(w1, b1, w2, b2, w3, b3):
    """One-time parameter prep (outside the hot path): transpose PyTorch-style
    [out, in] weights to [in, out], zero-pad every feature axis to a multiple of
    128 lanes, and cast weights to bf16 (biases stay f32 and are added after the
    f32-accumulated matmul).  Padded output-bias lanes get NEG_BIG so the
    in-kernel log-softmax ignores them."""
    D = w1.shape[1]
    H = w1.shape[0]
    O = w3.shape[0]
    Dp, Hp, Op = _round_up(D, LANE), _round_up(H, LANE), _round_up(O, LANE)

    def pad2(a, r, c):
        return jnp.pad(a, ((0, r - a.shape[0]), (0, c - a.shape[1])))

    w1t = pad2(w1.T, Dp, Hp).astype(jnp.bfloat16)
    w2t = pad2(w2.T, Hp, Hp).astype(jnp.bfloat16)
    w3t = pad2(w3.T, Hp, Op).astype(jnp.bfloat16)
    b1p = jnp.pad(b1, (0, Hp - H)).reshape(1, Hp).astype(jnp.float32)
    b2p = jnp.pad(b2, (0, Hp - H)).reshape(1, Hp).astype(jnp.float32)
    b3p = jnp.pad(b3, (0, Op - O), constant_values=NEG_BIG).reshape(1, Op).astype(jnp.float32)
    return (w1t, b1p, w2t, b2p, w3t, b3p)


@functools.partial(jax.jit, static_argnames=("out_features", "tile_b"))
def mlp_forward(x, params, *, out_features, tile_b=512):
    """x: [B, input_size] f32; params from prepare_params(); returns [B, out_features] f32."""
    w1t, b1p, w2t, b2p, w3t, b3p = params
    B, D = x.shape
    Dp, Hp = w1t.shape
    Op = w3t.shape[1]

    # ---- generation-aware VMEM budget (all trace-time Python arithmetic) ----
    phys = _physical_vmem_bytes()
    cap = max(16 * 2**20, phys - 8 * 2**20)   # leave headroom for internal scratch

    # bf16 weights + f32 biases; budget 2x for the resident blocks in case the
    # pipeline still double-buffers constant-index blocks.
    param_bytes = 2 * (Dp * Hp + Hp * Hp + Hp * Op) + 4 * (2 * Hp + Op)
    resident_bytes = 2 * param_bytes

    def act_bytes(tb):
        # x tile (f32, 2 bufs) + out tile (f32, 2 bufs) + f32 intermediates headroom
        return 4 * (2 * tb * Dp + 2 * tb * Op + 2 * tb * Hp)

    if resident_bytes + act_bytes(SUBLANE) > cap:
        # TODO(synk): weight-streaming fallback (tile fc2/fc3 along H with an
        # extra 'arbitrary' grid axis) for hidden sizes that exceed VMEM.
        raise ValueError(
            f"Resident MLP parameters ({resident_bytes >> 20} MiB) exceed the "
            f"VMEM budget ({cap >> 20} MiB); reduce hidden size or stream weights.")

    # ---- batch tiling: multiple of 8 sublanes, capped by batch and VMEM ----
    tile_b = _round_up(max(int(tile_b), SUBLANE), SUBLANE)
    tile_b = min(tile_b, _round_up(B, SUBLANE))
    while tile_b > SUBLANE and resident_bytes + act_bytes(tile_b) > cap:
        tile_b = _round_up(tile_b // 2, SUBLANE)

    Bp = _round_up(B, tile_b)
    xp = jnp.pad(x, ((0, Bp - B), (0, Dp - D)))
    num_tiles = Bp // tile_b
    grid = (num_tiles,)

    # Megacore sharding only pays off with enough grid steps; for short grids it
    # would duplicate the resident weights per TensorCore on v7x.
    semantics = ("parallel",) if num_tiles >= 4 else ("arbitrary",)

    vmem_limit = int(min(cap, max(16 * 2**20,
                                  resident_bytes + act_bytes(tile_b) + 4 * 2**20)))

    def resident(shape):
        # Whole-array block, same block index every step -> stays in VMEM.
        return pl.BlockSpec(shape, lambda i: (0, 0))

    cost = pl.CostEstimate(
        flops=2 * Bp * (Dp * Hp + Hp * Hp + Hp * Op),
        transcendentals=Bp * (Op + 1),            # exp + log in the softmax tail (EUP)
        bytes_accessed=4 * Bp * (Dp + Op) + param_bytes,
    )

    out = pl.pallas_call(
        mlp_kernel,
        out_shape=jax.ShapeDtypeStruct((Bp, Op), jnp.float32),
        grid=grid,
        in_specs=[
            pl.BlockSpec((tile_b, Dp), lambda i: (i, 0)),  # x: pipelined over batch
            resident((Dp, Hp)), resident((1, Hp)),         # fc1 weight / bias
            resident((Hp, Hp)), resident((1, Hp)),         # fc2 weight / bias
            resident((Hp, Op)), resident((1, Op)),         # fc3 weight / bias
        ],
        out_specs=pl.BlockSpec((tile_b, Op), lambda i: (i, 0)),
        compiler_params=pltpu.CompilerParams(
            dimension_semantics=semantics,
            vmem_limit_bytes=vmem_limit,
        ),
        cost_estimate=cost,
    )(xp, w1t, b1p, w2t, b2p, w3t, b3p)

    # Strip batch/feature padding outside the kernel (lane-dense stores inside).
    return out[:B, :out_features]


def _init_linear(key, out_features, in_features):
    # Deterministic PyTorch-like uniform init: U(-1/sqrt(in), 1/sqrt(in))
    kw, kb = jax.random.split(key)
    bound = 1.0 / jnp.sqrt(jnp.float32(in_features))
    w = jax.random.uniform(kw, (out_features, in_features), jnp.float32, -bound, bound)
    b = jax.random.uniform(kb, (out_features,), jnp.float32, -bound, bound)
    return w, b


def reference(x, w1, b1, w2, b2, w3, b3):
    h = x @ w1.T + b1
    h = jnp.where(h > 0, h, NEG_SLOPE * h)
    h = h @ w2.T + b2
    h = h @ w3.T + b3
    return jax.nn.log_softmax(h, axis=1)


if __name__ == "__main__":
    # Small shapes consistent with the module's forward: x is [batch, input_size]
    batch, input_size, hidden_size, output_size = 8, 32, 32, 16

    key = jax.random.PRNGKey(0)
    kx, k1, k2, k3 = jax.random.split(key, 4)

    x = jax.random.normal(kx, (batch, input_size), jnp.float32)
    w1, b1 = _init_linear(k1, hidden_size, input_size)
    w2, b2 = _init_linear(k2, hidden_size, hidden_size)
    w3, b3 = _init_linear(k3, output_size, hidden_size)

    # One-time param prep (transpose + pad + bf16 cast) — out of the per-call hot path.
    params = jax.block_until_ready(prepare_params(w1, b1, w2, b2, w3, b3))

    out = mlp_forward(x, params, out_features=output_size)
    out = jax.block_until_ready(out)

    ref = reference(x, w1, b1, w2, b2, w3, b3)
    assert out.shape == (batch, output_size)
    # bf16 matmul inputs with f32 accumulation: allow small numerical drift vs f32 ref.
    assert jnp.allclose(out, ref, atol=5e-2, rtol=5e-2), "mismatch vs reference"

    print("KERNEL_OK")
</pallas_src>

<mosaic_0001>
module attributes {stable_mosaic.version = 11 : i64} {
  func.func @mlp_kernel(%arg0: i32, %arg1: memref<8x128xf32, #tpu.memory_space<vmem>>, %arg2: memref<128x128xbf16, #tpu.memory_space<vmem>>, %arg3: memref<1x128xf32, #tpu.memory_space<vmem>>, %arg4: memref<128x128xbf16, #tpu.memory_space<vmem>>, %arg5: memref<1x128xf32, #tpu.memory_space<vmem>>, %arg6: memref<128x128xbf16, #tpu.memory_space<vmem>>, %arg7: memref<1x128xf32, #tpu.memory_space<vmem>>, %arg8: memref<8x128xf32, #tpu.memory_space<vmem>>) attributes {dimension_semantics = [#tpu.dimension_semantics<arbitrary>], iteration_bounds = array<i64: 1>, scalar_prefetch = 0 : i64, scratch_operands = 0 : i64, tpu.core_type = #tpu.core_type<tc>, window_params = [{transform_indices = @transform_0, window_bounds = array<i64: 8, 128>}, {pipeline_mode = #tpu.pipeline_mode<synchronous>, transform_indices = @transform_1, window_bounds = array<i64: 128, 128>}, {pipeline_mode = #tpu.pipeline_mode<synchronous>, transform_indices = @transform_2, window_bounds = array<i64: 1, 128>}, {pipeline_mode = #tpu.pipeline_mode<synchronous>, transform_indices = @transform_3, window_bounds = array<i64: 128, 128>}, {pipeline_mode = #tpu.pipeline_mode<synchronous>, transform_indices = @transform_4, window_bounds = array<i64: 1, 128>}, {pipeline_mode = #tpu.pipeline_mode<synchronous>, transform_indices = @transform_5, window_bounds = array<i64: 128, 128>}, {pipeline_mode = #tpu.pipeline_mode<synchronous>, transform_indices = @transform_6, window_bounds = array<i64: 1, 128>}, {transform_indices = @transform_7, window_bounds = array<i64: 8, 128>}]} {
    %c0 = arith.constant 0 : index
    %c0_0 = arith.constant 0 : index
    %0 = vector.load %arg1[%c0, %c0_0] : memref<8x128xf32, #tpu.memory_space<vmem>>, vector<8x128xf32>
    %1 = arith.truncf %0 : vector<8x128xf32> to vector<8x128xbf16>
    %c0_1 = arith.constant 0 : index
    %c0_2 = arith.constant 0 : index
    %2 = vector.load %arg2[%c0_1, %c0_2] : memref<128x128xbf16, #tpu.memory_space<vmem>>, vector<128x128xbf16>
    %cst = arith.constant dense<0.000000e+00> : vector<8x128xf32>
    %3 = tpu.matmul %1, %2, %cst {dimension_numbers = #tpu.dot_dimension_numbers<[1], [0], [0], [1], [0, 0, 1, 1], [], []>} : vector<8x128xbf16>, vector<128x128xbf16>, vector<8x128xf32> -> vector<8x128xf32>
    %c0_3 = arith.constant 0 : index
    %c0_4 = arith.constant 0 : index
    %4 = vector.load %arg3[%c0_3, %c0_4] : memref<1x128xf32, #tpu.memory_space<vmem>>, vector<1x128xf32>
    %5 = vector.broadcast %4 : vector<1x128xf32> to vector<8x128xf32>
    %6 = arith.addf %3, %5 : vector<8x128xf32>
    %cst_5 = arith.constant 0.00999999977 : f32
    %7 = vector.broadcast %cst_5 : f32 to vector<8x128xf32>
    %8 = arith.mulf %7, %6 : vector<8x128xf32>
    %9 = arith.maximumf %6, %8 : vector<8x128xf32>
    %10 = arith.truncf %9 : vector<8x128xf32> to vector<8x128xbf16>
    %c0_6 = arith.constant 0 : index
    %c0_7 = arith.constant 0 : index
    %11 = vector.load %arg4[%c0_6, %c0_7] : memref<128x128xbf16, #tpu.memory_space<vmem>>, vector<128x128xbf16>
    %cst_8 = arith.constant dense<0.000000e+00> : vector<8x128xf32>
    %12 = tpu.matmul %10, %11, %cst_8 {dimension_numbers = #tpu.dot_dimension_numbers<[1], [0], [0], [1], [0, 0, 1, 1], [], []>} : vector<8x128xbf16>, vector<128x128xbf16>, vector<8x128xf32> -> vector<8x128xf32>
    %c0_9 = arith.constant 0 : index
    %c0_10 = arith.constant 0 : index
    %13 = vector.load %arg5[%c0_9, %c0_10] : memref<1x128xf32, #tpu.memory_space<vmem>>, vector<1x128xf32>
    %14 = vector.broadcast %13 : vector<1x128xf32> to vector<8x128xf32>
    %15 = arith.addf %12, %14 : vector<8x128xf32>
    %16 = arith.truncf %15 : vector<8x128xf32> to vector<8x128xbf16>
    %c0_11 = arith.constant 0 : index
    %c0_12 = arith.constant 0 : index
    %17 = vector.load %arg6[%c0_11, %c0_12] : memref<128x128xbf16, #tpu.memory_space<vmem>>, vector<128x128xbf16>
    %cst_13 = arith.constant dense<0.000000e+00> : vector<8x128xf32>
    %18 = tpu.matmul %16, %17, %cst_13 {dimension_numbers = #tpu.dot_dimension_numbers<[1], [0], [0], [1], [0, 0, 1, 1], [], []>} : vector<8x128xbf16>, vector<128x128xbf16>, vector<8x128xf32> -> vector<8x128xf32>
    %c0_14 = arith.constant 0 : index
    %c0_15 = arith.constant 0 : index
    %19 = vector.load %arg7[%c0_14, %c0_15] : memref<1x128xf32, #tpu.memory_space<vmem>>, vector<1x128xf32>
    %20 = vector.broadcast %19 : vector<1x128xf32> to vector<8x128xf32>
    %21 = arith.addf %18, %20 : vector<8x128xf32>
    %cst_16 = arith.constant dense<0xFF800000> : vector<8xf32>
    %22 = vector.multi_reduction <maximumf>, %21, %cst_16 [1] : vector<8x128xf32> to vector<8xf32>
    %23 = vector.shape_cast %22 : vector<8xf32> to vector<8x1xf32>
    %24 = vector.broadcast %23 : vector<8x1xf32> to vector<8x128xf32>
    %25 = arith.subf %21, %24 : vector<8x128xf32>
    %26 = math.exp %25 : vector<8x128xf32>
    %cst_17 = arith.constant dense<0.000000e+00> : vector<8xf32>
    %27 = vector.multi_reduction <add>, %26, %cst_17 [1] : vector<8x128xf32> to vector<8xf32>
    %28 = vector.shape_cast %27 : vector<8xf32> to vector<8x1xf32>
    %29 = math.log %28 : vector<8x1xf32>
    %30 = vector.broadcast %29 : vector<8x1xf32> to vector<8x128xf32>
    %31 = arith.subf %25, %30 : vector<8x128xf32>
    %c0_18 = arith.constant 0 : index
    %c0_19 = arith.constant 0 : index
    %32 = vector.load %arg8[%c0_18, %c0_19] : memref<8x128xf32, #tpu.memory_space<vmem>>, vector<8x128xf32>
    tpu.vector_store %arg8[%c0_18, %c0_19], %31 {strides = array<i32>} : memref<8x128xf32, #tpu.memory_space<vmem>>, vector<8x128xf32>,
    return
  }
  func.func @transform_0(%arg0: i32) -> (i32, i32) {
    %c0_i32 = arith.constant 0 : i32
    %c0_i32_0 = arith.constant 0 : i32
    return %arg0, %c0_i32 : i32, i32
  }
  func.func @transform_1(%arg0: i32) -> (i32, i32) {
    %c0_i32 = arith.constant 0 : i32
    %c0_i32_0 = arith.constant 0 : i32
    %c0_i32_1 = arith.constant 0 : i32
    return %c0_i32, %c0_i32_0 : i32, i32
  }
  func.func @transform_2(%arg0: i32) -> (i32, i32) {
    %c0_i32 = arith.constant 0 : i32
    %c0_i32_0 = arith.constant 0 : i32
    %c0_i32_1 = arith.constant 0 : i32
    return %c0_i32, %c0_i32_0 : i32, i32
  }
  func.func @transform_3(%arg0: i32) -> (i32, i32) {
    %c0_i32 = arith.constant 0 : i32
    %c0_i32_0 = arith.constant 0 : i32
    %c0_i32_1 = arith.constant 0 : i32
    return %c0_i32, %c0_i32_0 : i32, i32
  }
  func.func @transform_4(%arg0: i32) -> (i32, i32) {
    %c0_i32 = arith.constant 0 : i32
    %c0_i32_0 = arith.constant 0 : i32
    %c0_i32_1 = arith.constant 0 : i32
    return %c0_i32, %c0_i32_0 : i32, i32
  }
  func.func @transform_5(%arg0: i32) -> (i32, i32) {
    %c0_i32 = arith.constant 0 : i32
    %c0_i32_0 = arith.constant 0 : i32
    %c0_i32_1 = arith.constant 0 : i32
    return %c0_i32, %c0_i32_0 : i32, i32
  }
  func.func @transform_6(%arg0: i32) -> (i32, i32) {
    %c0_i32 = arith.constant 0 : i32
    %c0_i32_0 = arith.constant 0 : i32
    %c0_i32_1 = arith.constant 0 : i32
    return %c0_i32, %c0_i32_0 : i32, i32
  }
  func.func @transform_7(%arg0: i32) -> (i32, i32) {
    %c0_i32 = arith.constant 0 : i32
    %c0_i32_0 = arith.constant 0 : i32
    return %arg0, %c0_i32 : i32, i32
  }
}

</mosaic_0001>

<bundles_post_ra>
// kernel: mlp_forward.1
= control target key start
LH: loop header
LB: loop body
LE: loop exit
PB: predicated region body
PF: predicated region fallthrough
CT: control target
= control target key end

     0   :  { %12 = vsyncpa [#allocation3], 0  ;;  %s833_s0 = inlined_call_operand.vmem [shape: f32[8,128], index: 0, kind: input, shape index: {}]   ;;  %s834_s1 = inlined_call_operand.hbm [shape: bf16[128,128], index: 1, kind: input, shape index: {}]   ;;  %s835_s2 = inlined_call_operand.vmem [shape: f32[1,128], index: 2, kind: input, shape index: {}]   ;;  %s836_s3 = inlined_call_operand.hbm [shape: bf16[128,128], index: 3, kind: input, shape index: {}]   ;;  %s837_s4 = inlined_call_operand.vmem [shape: f32[1,128], index: 4, kind: input, shape index: {}]   ;;  %s838_s5 = inlined_call_operand.hbm [shape: bf16[128,128], index: 5, kind: input, shape index: {}]   ;;  %s839_s6 = inlined_call_operand.vmem [shape: f32[1,128], index: 6, kind: input, shape index: {}]   ;;  %s840_s7 = inlined_call_operand.hbm [shape: f32[8,128], index: 7, kind: output, shape index: {}]  }
   0x1   :  { %13 = vsyncpa [#allocation6], 0 }
   0x2   :  { %14 = vsyncpa [#allocation4], 0  ;;  %s679_s24 = smov [#allocation5]   ;;  %s680_s26 = smov [#allocation2]  }
   0x3   :  { %s36_s25 = sshll.u32 %s679_s24, 4  ;;  %s22_s27 = sshll.u32 %s680_s26, 4  ;;  %s37_s25 = int_to_ptr.vmem [resolvable:$true] %s36_s25  ;;  %s727_s27 = int_to_ptr.vmem [resolvable:$true] %s22_s27 }
   0x4   :  { %s585_s30 = scalar_lea.hbm %s836_s3, 1024 }
   0x5   :  { %p586_p0 = scmp.ne.s32.totalorder %s836_s3, %s585_s30  ;;  %p589_p1 = scmp.lt.u32.totalorder %s585_s30, %s836_s3 }
   0x7   :  { %p591_p2 = pnand %p589_p1, %p586_p0 }
   0x9   :  { %594 = shalt.err (!%p591_p2)
}
   0xa   :  { %s595_s12 = scalar_lea.vmem %s37_s25, 1024  ;;  %p600_p4 = scmp.lt.s32.totalorder %s37_s25, %s37_s25 }
   0xb   :  { %p596_p3 = scmp.ne.s32.totalorder %s37_s25, %s595_s12  ;;  %p601_p5 = scmp.lt.s32.totalorder %s595_s12, %s595_s12 }
   0xd   :  { %p602_p6 = por %p601_p5, %p600_p4 }
   0xf   :  { %p603_p7 = pnand %p602_p6, %p596_p3 }
  0x11   :  { %606 = shalt.err (!%p603_p7)
}
  0x12   :  { %s681_s13 = smov 64   ;;  %s682_s14 = smov 4  }
  0x13   :  { %42 = dma.hbm_to_vmem [thread:$0]  %s836_s3, 1024, %s37_s25, [#allocation6], %s681_s13, %s681_s13, %s682_s14  }
  0x14   :  { %s607_s19 = scalar_lea.hbm %s834_s1, 1024 }
  0x15   :  { %p608_p8 = scmp.ne.s32.totalorder %s834_s1, %s607_s19  ;;  %p611_p9 = scmp.lt.u32.totalorder %s607_s19, %s834_s1 }
  0x17   :  { %p613_p10 = pnand %p611_p9, %p608_p8 }
  0x19   :  { %616 = shalt.err (!%p613_p10)
}
  0x1a   :  { %s617_s24 = scalar_lea.vmem %s727_s27, 1024  ;;  %p622_p12 = scmp.lt.s32.totalorder %s727_s27, %s727_s27 }
  0x1b   :  { %p618_p11 = scmp.ne.s32.totalorder %s727_s27, %s617_s24  ;;  %p623_p13 = scmp.lt.s32.totalorder %s617_s24, %s617_s24 }
  0x1d   :  { %p624_p0 = por %p623_p13, %p622_p12 }
  0x1f   :  { %p625_p1 = pnand %p624_p0, %p618_p11 }
  0x21   :  { %628 = shalt.err (!%p625_p1)
}
  0x22   :  { %28 = dma.hbm_to_vmem [thread:$0]  %s834_s1, 1024, %s727_s27, [#allocation3], %s681_s13, %s681_s13, %s682_s14  }
  0x23   :  { %s683_s26 = smov [#allocation7]   ;;  %s629_s8 = scalar_lea.hbm %s838_s5, 1024 }
  0x24   :  { %s50_s28 = sshll.u32 %s683_s26, 4  ;;  %p630_p2 = scmp.ne.s32.totalorder %s838_s5, %s629_s8  ;;  %s51_s28 = int_to_ptr.vmem [resolvable:$true] %s50_s28 }
  0x25   :  { %p633_p3 = scmp.lt.u32.totalorder %s629_s8, %s838_s5 }
  0x27   :  { %p635_p4 = pnand %p633_p3, %p630_p2 }
  0x29   :  { %638 = shalt.err (!%p635_p4)
}
  0x2a   :  { %s639_s15 = scalar_lea.vmem %s51_s28, 1024  ;;  %p644_p6 = scmp.lt.s32.totalorder %s51_s28, %s51_s28 }
  0x2b   :  { %p640_p5 = scmp.ne.s32.totalorder %s51_s28, %s639_s15  ;;  %p645_p7 = scmp.lt.s32.totalorder %s639_s15, %s639_s15 }
  0x2d   :  { %p646_p8 = por %p645_p7, %p644_p6 }
  0x2f   :  { %p647_p9 = pnand %p646_p8, %p640_p5 }
  0x31   :  { %650 = shalt.err (!%p647_p9)
}
  0x32   :  { %56 = dma.hbm_to_vmem [thread:$0]  %s838_s5, 1024, %s51_s28, [#allocation6], %s681_s13, %s681_s13, %s682_s14  }
  0x33   :  { %673 = dma.done.wait [#allocation3], 1024  }
  0x34   :  { %674 = vsyncadd [#allocation3], 4294966272 }
  0x35   :  { %675 = dma.done.wait [#allocation6], 2048  }
  0x36   :  { %676 = vsyncadd [#allocation6], 4294965248  ;;  %v684_v0 = vmov 0.0   ;;  %vm685_vm0 = vmmov 0   ;;  %v557_v1 = vld [vmem:[#allocation2] sm:$0xff]   ;;  %v558_v2 = vld [vmem:[#allocation2 + $0x8] sm:$0xff]  }
  0x37   :  { %489 = vmatprep.subr.bf16.mxu0 %v684_v0  ;;  %505 = vmatprep.mubr.msk.bf16.mxu0 %vm685_vm0, %v684_v0  ;;  %v559_v3 = vld [vmem:[#allocation2 + $0x10] sm:$0xff]   ;;  %v565_v4 = vld [vmem:[#allocation5] sm:$0xff]   ;;  %v560_v5 = vld [vmem:[#allocation2 + $0x18] sm:$0xff]  }
  0x38   :  { %509 = vmatprep.subr.bf16.mxu1 %v684_v0  ;;  %525 = vmatprep.mubr.msk.bf16.mxu1 %vm685_vm0, %v684_v0  ;;  %v566_v6 = vld [vmem:[#allocation5 + $0x8] sm:$0xff]   ;;  %v561_v7 = vld [vmem:[#allocation2 + $0x20] sm:$0xff]   ;;  %v567_v8 = vld [vmem:[#allocation5 + $0x10] sm:$0xff]  }
  0x39   :  { %490 = vmatpush3.bf16.msra.mxu0 %v557_v1  ;;  %510 = vmatpush3.bf16.msra.mxu1 %v565_v4  ;;  %v562_v9 = vld [vmem:[#allocation2 + $0x28] sm:$0xff]   ;;  %v568_v10 = vld [vmem:[#allocation5 + $0x18] sm:$0xff]   ;;  %v563_v11 = vld [vmem:[#allocation2 + $0x30] sm:$0xff]  }
  0x3a   :  { %491 = vmatprep.subr.bf16.mxu0 %v684_v0  ;;  %511 = vmatprep.subr.bf16.mxu1 %v684_v0  ;;  %v569_v12 = vld [vmem:[#allocation5 + $0x20] sm:$0xff]   ;;  %v564_v13 = vld [vmem:[#allocation2 + $0x38] sm:$0xff]   ;;  %v570_v15 = vld [vmem:[#allocation5 + $0x28] sm:$0xff]  }
  0x3b   :  { %v69_v14 = vld [vmem:[%s833_s0] sm:$0xff]  ;;  %v571_v17 = vld [vmem:[#allocation5 + $0x30] sm:$0xff]   ;;  %v572_v18 = vld [vmem:[#allocation5 + $0x38] sm:$0xff]  }
  0x3c   :  { %v70_v16 = vpack.c.bf16 %v69_v14, %v69_v14  ;;  %v573_v19 = vld [vmem:[#allocation7] sm:$0xff]   ;;  %v574_v20 = vld [vmem:[#allocation7 + $0x8] sm:$0xff]   ;;  %v575_v21 = vld [vmem:[#allocation7 + $0x10] sm:$0xff]  }
  0x3d   :  { %492 = vmatpush3.bf16.msra.mxu0 %v558_v2  ;;  %512 = vmatpush3.bf16.msra.mxu1 %v566_v6  ;;  %v576_v22 = vld [vmem:[#allocation7 + $0x18] sm:$0xff]   ;;  %v577_v23 = vld [vmem:[#allocation7 + $0x20] sm:$0xff]   ;;  %v578_v24 = vld [vmem:[#allocation7 + $0x28] sm:$0xff]  }
  0x3e   :  { %493 = vmatprep.subr.bf16.mxu0 %v684_v0  ;;  %513 = vmatprep.subr.bf16.mxu1 %v684_v0  ;;  %v579_v25 = vld [vmem:[#allocation7 + $0x30] sm:$0xff]   ;;  %v435_v26 = vld [vmem:[%s835_s2] ss:$0 sm:$0xff]  ;;  %v580_v35 = vld [vmem:[#allocation7 + $0x38] sm:$0xff]  }
  0x3f   :  { %v444_v36 = vld [vmem:[%s837_s4] ss:$0 sm:$0xff]  ;;  %s686_s4 = smov [#allocation8]  }
  0x40   :  { %v453_v43 = vld [vmem:[%s839_s6] ss:$0 sm:$0xff]  ;;  %s425_s19 = sshll.u32 %s686_s4, 4  ;;  %s426_s19 = int_to_ptr.vmem [resolvable:$true] %s425_s19 }
  0x41   :  { %494 = vmatpush3.bf16.msra.mxu0 %v559_v3  ;;  %514 = vmatpush3.bf16.msra.mxu1 %v567_v8  ;;  %s651_s6 = scalar_lea.vmem %s426_s19, 128  ;;  %p656_p11 = scmp.lt.s32.totalorder %s426_s19, %s426_s19 }
  0x42   :  { %495 = vmatprep.subr.bf16.mxu0 %v684_v0  ;;  %515 = vmatprep.subr.bf16.mxu1 %v684_v0  ;;  %p652_p10 = scmp.ne.s32.totalorder %s426_s19, %s651_s6  ;;  %p657_p12 = scmp.lt.s32.totalorder %s651_s6, %s651_s6 }
  0x44   :  { %p658_p13 = por %p657_p12, %p656_p11 }
  0x45   :  { %496 = vmatpush3.bf16.msra.mxu0 %v560_v5  ;;  %516 = vmatpush3.bf16.msra.mxu1 %v568_v10 }
  0x46   :  { %497 = vmatprep.subr.bf16.mxu0 %v684_v0  ;;  %517 = vmatprep.subr.bf16.mxu1 %v684_v0  ;;  %p659_p0 = pnand %p658_p13, %p652_p10 }
  0x49   :  { %498 = vmatpush3.bf16.msra.mxu0 %v561_v7  ;;  %518 = vmatpush3.bf16.msra.mxu1 %v569_v12 }
  0x4a   :  { %499 = vmatprep.subr.bf16.mxu0 %v684_v0  ;;  %519 = vmatprep.subr.bf16.mxu1 %v684_v0 }
  0x4d   :  { %500 = vmatpush3.bf16.msra.mxu0 %v562_v9  ;;  %520 = vmatpush3.bf16.msra.mxu1 %v570_v15 }
  0x4e   :  { %501 = vmatprep.subr.bf16.mxu0 %v684_v0  ;;  %521 = vmatprep.subr.bf16.mxu1 %v684_v0 }
  0x51   :  { %502 = vmatpush3.bf16.msra.mxu0 %v563_v11  ;;  %522 = vmatpush3.bf16.msra.mxu1 %v571_v17 }
  0x52   :  { %503 = vmatprep.subr.bf16.mxu0 %v684_v0  ;;  %523 = vmatprep.subr.bf16.mxu1 %v684_v0 }
  0x55   :  { %504 = vmatpush3.bf16.msra.mxu0 %v564_v13  ;;  %524 = vmatpush3.bf16.msra.mxu1 %v572_v18 }
  0x56   :  { %529 = vmatprep.subr.bf16.mxu0 %v684_v0 }
  0x58   :  { %506 = vmatmul.mubr.bf16.vlgmr.msra.gmra.mrb[0].mxu0 %v70_v16 }
  0x59   :  { %545 = vmatprep.mubr.msk.bf16.mxu0 %vm685_vm0, %v684_v0  ;;  %530 = vmatpush3.bf16.msra.mxu0 %v573_v19 }
  0x5a   :  { %531 = vmatprep.subr.bf16.mxu0 %v684_v0 }
  0x5d   :  { %532 = vmatpush3.bf16.msra.mxu0 %v574_v20 }
  0x5e   :  { %533 = vmatprep.subr.bf16.mxu0 %v684_v0 }
  0x61   :  { %534 = vmatpush3.bf16.msra.mxu0 %v575_v21 }
  0x62   :  { %535 = vmatprep.subr.bf16.mxu0 %v684_v0 }
  0x65   :  { %536 = vmatpush3.bf16.msra.mxu0 %v576_v22 }
  0x66   :  { %537 = vmatprep.subr.bf16.mxu0 %v684_v0 }
  0x69   :  { %538 = vmatpush3.bf16.msra.mxu0 %v577_v23 }
  0x6a   :  { %539 = vmatprep.subr.bf16.mxu0 %v684_v0 }
  0x6d   :  { %540 = vmatpush3.bf16.msra.mxu0 %v578_v24 }
  0x6e   :  { %541 = vmatprep.subr.bf16.mxu0 %v684_v0 }
  0x71   :  { %542 = vmatpush3.bf16.msra.mxu0 %v579_v25 }
  0x72   :  { %543 = vmatprep.subr.bf16.mxu0 %v684_v0 }
  0x75   :  { %544 = vmatpush3.bf16.msra.mxu0 %v580_v35 }
 0x12b   :  { %v176_v27 = vpop.f32.mrb[0].mxu0 }
 0x12c   :  { %v177_v28 = vadd.f32 %v435_v26, %v176_v27  ;;  %v507_v29 = vpop.f32.mrb[1].mxu0 }
 0x12d   :  { %v179_v30 = vpop.f32.mrb[2].mxu0 }
 0x12e   :  { %v182_v31 = vmul.f32 0.01, %v177_v28  ;;  %v508_v32 = vpop.f32.mrb[3].mxu0 }
 0x130   :  { %v183_v33 = vmax.f32 %v177_v28, %v182_v31 }
 0x132   :  { %v184_v34 = vpack.c.bf16 %v183_v33, %v183_v33 }
 0x134   :  { %526 = vmatmul.mubr.bf16.vlgmr.msra.gmra.mrb[0].mxu1 %v184_v34 }
 0x207   :  { %v290_v37 = vpop.f32.mrb[0].mxu1 }
 0x208   :  { %v291_v38 = vadd.f32 %v444_v36, %v290_v37  ;;  %v527_v39 = vpop.f32.mrb[1].mxu1 }
 0x209   :  { %v293_v40 = vpop.f32.mrb[2].mxu1 }
 0x20a   :  { %v296_v41 = vpack.c.bf16 %v291_v38, %v291_v38  ;;  %v528_v42 = vpop.f32.mrb[3].mxu1 }
 0x20c   :  { %546 = vmatmul.mubr.bf16.vlgmr.msra.gmra.mrb[4].mxu0 %v296_v41 }
 0x2df   :  { %v402_v44 = vpop.f32.mrb[4].mxu0 }
 0x2e0   :  { %v403_v45 = vadd.f32 %v453_v43, %v402_v44  ;;  %v547_v46 = vpop.f32.mrb[5].mxu0 }
 0x2e1   :  { %v405_v47 = vpop.f32.mrb[6].mxu0 }
 0x2e2   :  { %408 = vmax.xlane.f32.xlu0 %v403_v45  ;;  %v548_v48 = vpop.f32.mrb[7].mxu0 }
 0x36f   :  { %v409_v49 = vpop.xlane.xlu0 %408 }
 0x370   :  { %v410_v50 = vsub.f32 %v403_v45, %v409_v49 }
 0x372   :  { %v411_v51 = vmul.f32 1.442695, %v410_v50 }
 0x374   :  { %581 = vpow2.f32 %v411_v51 }
 0x37e   :  { %v582_v52 = vpop.eup %581 }
 0x37f   :  { %413 = vadd.xlane.f32.xlu0 %v582_v52 }
 0x40c   :  { %v414_v53 = vpop.xlane.xlu0 %413 }
 0x40d   :  { %583 = vlog2.f32 %v414_v53 }
 0x417   :  { %v584_v54 = vpop.eup %583 }
 0x418   :  { %v416_v55 = vmul.f32 0.6931472, %v584_v54 }
 0x41a   :  { %v417_v56 = vsub.f32 %v410_v50, %v416_v55 }
 0x41c   :  { %418 = vst [vmem:[#allocation8] sm:$0xff] %v417_v56 }
 0x41d   :  { %662 = shalt.err (!%p659_p0)
}
 0x41e   :  { %s663_s22 = scalar_lea.hbm %s840_s7, 128 }
 0x41f   :  { %p664_p1 = scmp.ne.s32.totalorder %s840_s7, %s663_s22  ;;  %p667_p2 = scmp.lt.u32.totalorder %s663_s22, %s840_s7 }
 0x421   :  { %p669_p3 = pnand %p667_p2, %p664_p1 }
 0x423   :  { %672 = shalt.err (!%p669_p3)
}
 0x424   :  { %428 = dma.vmem_to_hbm [thread:$0]  %s426_s19, 128, %s840_s7, [#allocation4]  }
 0x425   :  { %677 = dma.done.wait [#allocation4], 128  }
 0x426   :  { %678 = vsyncadd [#allocation4], 4294967168 }
 0x427   :  { %432 = vsyncpa [#allocation3], 1 }
 0x428   :  { %433 = vsyncpa [#allocation6], 1 }
 0x429   :  { %434 = vsyncpa [#allocation4], 1 }

</bundles_post_ra>
